<compile_context>
chip_gen: v6e
topology: v6e:2x2x1
jax: 0.10.0
libtpu: 0.0.40
codegen_flags: <defaults>
</compile_context>

<pallas_src>
import jax
import jax.numpy as jnp
from jax.experimental import pallas as pl
from jax.experimental.pallas import tpu as pltpu


def _largest_aligned_divisor(n, align, cap):
    """Largest multiple of `align` that divides `n` and is <= cap (>= align)."""
    if n % align != 0:
        return n
    best = align
    t = align
    limit = min(n, max(cap, align))
    while t <= limit:
        if n % t == 0:
            best = t
        t += align
    return best


def _vmem_capacity_bytes():
    try:
        return int(pltpu.get_tpu_info().vmem_capacity_bytes)
    except Exception:
        return 64 * 1024 * 1024  # conservative fallback: v7x per-TensorCore VMEM


def _pick_tiles(B, D, itemsize, block_budget, tile_b=None, tile_d=None):
    """Pick (batch, feature) tile sizes respecting the (8, 128) rule."""
    max_elems = max(block_budget // itemsize, 8 * 128)

    # Feature (lane) tile: multiple of 128 dividing D, or full D.
    if tile_d is not None:
        td = tile_d
    elif D % 128 != 0:
        td = D  # full-extent block satisfies the (8, 128) rule
    else:
        # Leave room for a reasonably tall batch tile (>= 256 rows or full B).
        rows_target = min(max(B, 8), 256)
        td = _largest_aligned_divisor(D, 128, max(128, max_elems // rows_target))

    # Batch (sublane) tile.
    if tile_b is not None:
        tb = tile_b
    elif B * td <= max_elems or B % 8 != 0 or B <= 8:
        # Full batch fits, or cannot be tiled legally: keep full extent.
        # TODO(synk): pad/mask the batch axis so it can be tiled when
        # B % 8 != 0 and the full-batch block exceeds the VMEM budget.
        tb = B
    else:
        tb = _largest_aligned_divisor(B, 8, max(8, max_elems // td))
    return tb, td


def weighted_balance_loss(pred, target, *, gamma=2.0, apply_sigmoid=True,
                          epsilon=1e-10, tile_b=None, tile_d=None):
    assert pred.ndim == 2 and pred.shape == target.shape
    B, D = pred.shape

    itemsize = max(jnp.dtype(pred.dtype).itemsize, jnp.dtype(target.dtype).itemsize)
    vmem_cap = _vmem_capacity_bytes()
    # 2 inputs x 2 pipeline buffers -> 4 resident input blocks; keep them at
    # ~40% of VMEM, leaving the rest for scratch/output/internal headroom.
    block_budget = vmem_cap // 10
    tb, td = _pick_tiles(B, D, itemsize, block_budget, tile_b, tile_d)
    assert B % tb == 0 and D % td == 0, (B, D, tb, td)

    n_feat = D // td
    n_b = B // tb
    sub = 8 if tb % 8 == 0 else tb  # sublane rows kept in the carried accumulators

    # Leading 2-way "parallel" split over the feature tiles so both v7x
    # TensorCores can take half; each split accumulates its own (8,128) block.
    # TODO(synk): verify in a trace that "parallel" shards across both v7x
    # TensorCores; switch to pltpu.CORE_PARALLEL / pl.core_map if it doesn't.
    nsplit = 2 if (n_feat % 2 == 0 and n_feat >= 2) else 1
    tiles_per_split = n_feat // nsplit

    batch_total = float(B)
    gamma = float(gamma)
    epsilon = float(epsilon)

    def kernel(pred_ref, target_ref, out_ref, pos_acc, neg_acc, nz_acc):
        i = pl.program_id(1)  # feature tile within this split
        j = pl.program_id(2)  # batch tile (reduction axis)

        @pl.when((i == 0) & (j == 0))
        def _():
            out_ref[...] = jnp.zeros_like(out_ref)

        @pl.when(j == 0)
        def _():
            pos_acc[...] = jnp.zeros_like(pos_acc)
            neg_acc[...] = jnp.zeros_like(neg_acc)
            nz_acc[...] = jnp.zeros_like(nz_acc)

        x = pred_ref[...].astype(jnp.float32)
        t = target_ref[...].astype(jnp.float32)

        if apply_sigmoid:
            # Fused, numerically-stable sigmoid + log path (one exp + one log1p).
            e = jnp.exp(-jnp.abs(x))
            log1pe = jnp.log1p(e)
            neg_log_1mp = jnp.maximum(x, 0.0) + log1pe   # softplus(x)  = -log(1-p)
            neg_log_p = jnp.maximum(-x, 0.0) + log1pe    # softplus(-x) = -log(p)
            inv = pl.reciprocal(1.0 + e, approx=True)    # EUP slot, ~free
            p = jnp.where(x >= 0.0, inv, e * inv)        # sigmoid(x)
        else:
            p = x
            neg_log_p = -jnp.log(p)
            neg_log_1mp = -jnp.log(1.0 - p)

        one_m_p = 1.0 - p
        if gamma == 2.0:
            w_pos = one_m_p * one_m_p                    # (1-p)^gamma, VALU only
            w_neg = p * p                                # p^gamma,     VALU only
        else:
            w_pos = jnp.power(one_m_p, gamma)
            w_neg = jnp.power(p, gamma)

        pos = w_pos * t * neg_log_p                      # -(1-p)^g * t     * log(p)
        neg = w_neg * (1.0 - t) * neg_log_1mp            # -p^g     * (1-t) * log(1-p)
        nz = (t != 0.0).astype(jnp.float32)              # count_nonzero contribution

        # Carried per-feature partial sums: sublane-group folding is pure
        # vreg-wise VALU adds, no lane relayout.
        if tb == sub:
            pos_acc[...] += pos
            neg_acc[...] += neg
            nz_acc[...] += nz
        else:
            pos_acc[...] += pos.reshape(tb // sub, sub, td).sum(axis=0)
            neg_acc[...] += neg.reshape(tb // sub, sub, td).sum(axis=0)
            nz_acc[...] += nz.reshape(tb // sub, sub, td).sum(axis=0)

        @pl.when(j == n_b - 1)
        def _():
            # Per-feature counts over the *full* batch; the 1/n divide
            # factorizes out of the batch sum. Count reciprocals are tiny
            # (once per feature tile on a (1, td) row) -> keep them exact.
            nz_col = jnp.sum(nz_acc[...], axis=0, keepdims=True)        # (1, td)
            inv_npos = pl.reciprocal(nz_col + epsilon)
            inv_nneg = pl.reciprocal((batch_total - nz_col) + epsilon)
            term = pos_acc[...] * inv_npos + neg_acc[...] * inv_nneg    # (sub, td)
            # Vreg-shaped accumulation into the resident (8, 128) output block;
            # the final cross-lane reduce happens in the wrapper's jnp.sum.
            # TODO(synk): optionally offload this fold to the idle MXU on v7x.
            if sub == 8 and td % 128 == 0:
                if td == 128:
                    out_ref[...] += term
                else:
                    out_ref[...] += term.reshape(8, td // 128, 128).sum(axis=1)
            else:
                out_ref[0, 0] += jnp.sum(term)

    def in_map(s, i, j):
        return (j, s * tiles_per_split + i)

    cost = pl.CostEstimate(
        flops=18 * B * D,
        transcendentals=2 * B * D,  # one exp + one log1p per element
        bytes_accessed=(jnp.dtype(pred.dtype).itemsize
                        + jnp.dtype(target.dtype).itemsize) * B * D
        + nsplit * 8 * 128 * 4,
    )

    out = pl.pallas_call(
        kernel,
        out_shape=jax.ShapeDtypeStruct((8 * nsplit, 128), jnp.float32),
        grid_spec=pltpu.PrefetchScalarGridSpec(
            num_scalar_prefetch=0,
            grid=(nsplit, tiles_per_split, n_b),
            in_specs=[
                pl.BlockSpec((tb, td), in_map),
                pl.BlockSpec((tb, td), in_map),
            ],
            # Lane/sublane-aligned partial-sum block per split, resident across
            # both "arbitrary" axes (feature tiles and batch tiles).
            out_specs=pl.BlockSpec((8, 128), lambda s, i, j: (s, 0)),
            scratch_shapes=[
                pltpu.VMEM((sub, td), jnp.float32),  # sum_b positive_side
                pltpu.VMEM((sub, td), jnp.float32),  # sum_b negative_side
                pltpu.VMEM((sub, td), jnp.float32),  # count_nonzero partial
            ],
        ),
        compiler_params=pltpu.CompilerParams(
            dimension_semantics=("parallel", "arbitrary", "arbitrary"),
            vmem_limit_bytes=int(vmem_cap * 3 // 4),
        ),
        cost_estimate=cost,
    )(pred, target)
    # Each split's partial sums fill its own (8,128) block; unused entries are 0.
    return jnp.sum(out)


def weighted_balance_loss_ref(pred, target, *, gamma=2.0, apply_sigmoid=True,
                              epsilon=1e-10):
    p = jax.nn.sigmoid(pred) if apply_sigmoid else pred
    t = target
    pos = -jnp.power(1.0 - p, gamma) * t * jnp.log(p)
    neg = -jnp.power(p, gamma) * (1.0 - t) * jnp.log(1.0 - p)
    n_pos = jnp.sum((t != 0).astype(jnp.float32), axis=0) + epsilon
    n_neg = jnp.sum((t == 0).astype(jnp.float32), axis=0) + epsilon
    return jnp.sum(pos / n_pos + neg / n_neg)


if __name__ == "__main__":
    key = jax.random.PRNGKey(0)
    k1, k2 = jax.random.split(key)
    B, D = 16, 512
    pred = jax.random.normal(k1, (B, D), dtype=jnp.float32)
    target = (jax.random.uniform(k2, (B, D)) > 0.5).astype(jnp.float32)

    ref = weighted_balance_loss_ref(pred, target)

    # Explicit small tiles exercise the full grid:
    # 2-way "parallel" split x 2 feature tiles x 2 batch tiles, with the
    # carried per-feature accumulators crossing a batch-tile boundary.
    loss = weighted_balance_loss(pred, target, tile_b=8, tile_d=128)
    jax.block_until_ready(loss)
    assert jnp.allclose(loss, ref, rtol=2e-3, atol=2e-3), (loss, ref)

    # Auto-tiled path (single large block at this size).
    loss2 = weighted_balance_loss(pred, target)
    jax.block_until_ready(loss2)
    assert jnp.allclose(loss2, ref, rtol=2e-3, atol=2e-3), (loss2, ref)

    print("KERNEL_OK")
</pallas_src>

<mosaic_0001>
module attributes {stable_mosaic.version = 11 : i64} {
  func.func @kernel(%arg0: i32, %arg1: i32, %arg2: i32, %arg3: memref<8x128xf32, #tpu.memory_space<vmem>>, %arg4: memref<8x128xf32, #tpu.memory_space<vmem>>, %arg5: memref<8x128xf32, #tpu.memory_space<vmem>>, %arg6: memref<8x128xf32, #tpu.memory_space<vmem>>, %arg7: memref<8x128xf32, #tpu.memory_space<vmem>>, %arg8: memref<8x128xf32, #tpu.memory_space<vmem>>) attributes {dimension_semantics = [#tpu.dimension_semantics<parallel>, #tpu.dimension_semantics<arbitrary>, #tpu.dimension_semantics<arbitrary>], iteration_bounds = array<i64: 2, 2, 2>, scalar_prefetch = 0 : i64, scratch_operands = 3 : i64, tpu.core_type = #tpu.core_type<tc>, window_params = [{transform_indices = @transform_0, window_bounds = array<i64: 8, 128>}, {transform_indices = @transform_1, window_bounds = array<i64: 8, 128>}, {transform_indices = @transform_2, window_bounds = array<i64: 8, 128>}]} {
    %c0_i32 = arith.constant 0 : i32
    %0 = arith.cmpi eq, %arg1, %c0_i32 : i32
    %c0_i32_0 = arith.constant 0 : i32
    %1 = arith.cmpi eq, %arg2, %c0_i32_0 : i32
    %2 = arith.andi %0, %1 : i1
    %3 = arith.extui %2 : i1 to i32
    %c0_i32_1 = arith.constant 0 : i32
    %4 = arith.cmpi ne, %3, %c0_i32_1 : i32
    scf.if %4 {
      %cst_28 = arith.constant 0.000000e+00 : f32
      %56 = vector.broadcast %cst_28 : f32 to vector<8x128xf32>
      %c0_29 = arith.constant 0 : index
      %c0_30 = arith.constant 0 : index
      %57 = vector.load %arg5[%c0_29, %c0_30] : memref<8x128xf32, #tpu.memory_space<vmem>>, vector<8x128xf32>
      tpu.vector_store %arg5[%c0_29, %c0_30], %56 {strides = array<i32>} : memref<8x128xf32, #tpu.memory_space<vmem>>, vector<8x128xf32>,
    } else {
    }
    %c0_i32_2 = arith.constant 0 : i32
    %5 = arith.cmpi eq, %arg2, %c0_i32_2 : i32
    %6 = arith.extui %5 : i1 to i32
    %c0_i32_3 = arith.constant 0 : i32
    %7 = arith.cmpi ne, %6, %c0_i32_3 : i32
    scf.if %7 {
      %cst_28 = arith.constant 0.000000e+00 : f32
      %56 = vector.broadcast %cst_28 : f32 to vector<8x128xf32>
      %c0_29 = arith.constant 0 : index
      %c0_30 = arith.constant 0 : index
      %57 = vector.load %arg6[%c0_29, %c0_30] : memref<8x128xf32, #tpu.memory_space<vmem>>, vector<8x128xf32>
      tpu.vector_store %arg6[%c0_29, %c0_30], %56 {strides = array<i32>} : memref<8x128xf32, #tpu.memory_space<vmem>>, vector<8x128xf32>,
      %cst_31 = arith.constant 0.000000e+00 : f32
      %58 = vector.broadcast %cst_31 : f32 to vector<8x128xf32>
      %c0_32 = arith.constant 0 : index
      %c0_33 = arith.constant 0 : index
      %59 = vector.load %arg7[%c0_32, %c0_33] : memref<8x128xf32, #tpu.memory_space<vmem>>, vector<8x128xf32>
      tpu.vector_store %arg7[%c0_32, %c0_33], %58 {strides = array<i32>} : memref<8x128xf32, #tpu.memory_space<vmem>>, vector<8x128xf32>,
      %cst_34 = arith.constant 0.000000e+00 : f32
      %60 = vector.broadcast %cst_34 : f32 to vector<8x128xf32>
      %c0_35 = arith.constant 0 : index
      %c0_36 = arith.constant 0 : index
      %61 = vector.load %arg8[%c0_35, %c0_36] : memref<8x128xf32, #tpu.memory_space<vmem>>, vector<8x128xf32>
      tpu.vector_store %arg8[%c0_35, %c0_36], %60 {strides = array<i32>} : memref<8x128xf32, #tpu.memory_space<vmem>>, vector<8x128xf32>,
    } else {
    }
    %c0 = arith.constant 0 : index
    %c0_4 = arith.constant 0 : index
    %8 = vector.load %arg3[%c0, %c0_4] : memref<8x128xf32, #tpu.memory_space<vmem>>, vector<8x128xf32>
    %c0_5 = arith.constant 0 : index
    %c0_6 = arith.constant 0 : index
    %9 = vector.load %arg4[%c0_5, %c0_6] : memref<8x128xf32, #tpu.memory_space<vmem>>, vector<8x128xf32>
    %10 = math.absf %8 : vector<8x128xf32>
    %cst = arith.constant 0.000000e+00 : f32
    %11 = vector.broadcast %cst : f32 to vector<8x128xf32>
    %12 = arith.subf %11, %10 : vector<8x128xf32>
    %13 = math.exp %12 : vector<8x128xf32>
    %14 = math.log1p %13 : vector<8x128xf32>
    %cst_7 = arith.constant 0.000000e+00 : f32
    %15 = vector.broadcast %cst_7 : f32 to vector<8x128xf32>
    %16 = arith.maximumf %8, %15 : vector<8x128xf32>
    %17 = arith.addf %16, %14 : vector<8x128xf32>
    %cst_8 = arith.constant 0.000000e+00 : f32
    %18 = vector.broadcast %cst_8 : f32 to vector<8x128xf32>
    %19 = arith.subf %18, %8 : vector<8x128xf32>
    %cst_9 = arith.constant 0.000000e+00 : f32
    %20 = vector.broadcast %cst_9 : f32 to vector<8x128xf32>
    %21 = arith.maximumf %19, %20 : vector<8x128xf32>
    %22 = arith.addf %21, %14 : vector<8x128xf32>
    %cst_10 = arith.constant 1.000000e+00 : f32
    %23 = vector.broadcast %cst_10 : f32 to vector<8x128xf32>
    %24 = arith.addf %23, %13 : vector<8x128xf32>
    %25 = tpu.reciprocal %24 {approx = true} : vector<8x128xf32> -> vector<8x128xf32>
    %cst_11 = arith.constant 0.000000e+00 : f32
    %26 = vector.broadcast %cst_11 : f32 to vector<8x128xf32>
    %27 = arith.cmpf oge, %8, %26 : vector<8x128xf32>
    %28 = arith.mulf %13, %25 : vector<8x128xf32>
    %29 = arith.select %27, %25, %28 : vector<8x128xi1>, vector<8x128xf32>
    %cst_12 = arith.constant 1.000000e+00 : f32
    %30 = vector.broadcast %cst_12 : f32 to vector<8x128xf32>
    %31 = arith.subf %30, %29 : vector<8x128xf32>
    %32 = arith.mulf %31, %31 : vector<8x128xf32>
    %33 = arith.mulf %29, %29 : vector<8x128xf32>
    %34 = arith.mulf %32, %9 : vector<8x128xf32>
    %35 = arith.mulf %34, %22 : vector<8x128xf32>
    %cst_13 = arith.constant 1.000000e+00 : f32
    %36 = vector.broadcast %cst_13 : f32 to vector<8x128xf32>
    %37 = arith.subf %36, %9 : vector<8x128xf32>
    %38 = arith.mulf %33, %37 : vector<8x128xf32>
    %39 = arith.mulf %38, %17 : vector<8x128xf32>
    %cst_14 = arith.constant 0.000000e+00 : f32
    %40 = vector.broadcast %cst_14 : f32 to vector<8x128xf32>
    %41 = arith.cmpf one, %9, %40 : vector<8x128xf32>
    %42 = arith.extui %41 : vector<8x128xi1> to vector<8x128xi32>
    %43 = arith.sitofp %42 : vector<8x128xi32> to vector<8x128xf32>
    %c0_15 = arith.constant 0 : index
    %c0_16 = arith.constant 0 : index
    %44 = vector.load %arg6[%c0_15, %c0_16] : memref<8x128xf32, #tpu.memory_space<vmem>>, vector<8x128xf32>
    %45 = arith.addf %44, %35 : vector<8x128xf32>
    %c0_17 = arith.constant 0 : index
    %c0_18 = arith.constant 0 : index
    %46 = vector.load %arg6[%c0_17, %c0_18] : memref<8x128xf32, #tpu.memory_space<vmem>>, vector<8x128xf32>
    tpu.vector_store %arg6[%c0_17, %c0_18], %45 {strides = array<i32>} : memref<8x128xf32, #tpu.memory_space<vmem>>, vector<8x128xf32>,
    %c0_19 = arith.constant 0 : index
    %c0_20 = arith.constant 0 : index
    %47 = vector.load %arg7[%c0_19, %c0_20] : memref<8x128xf32, #tpu.memory_space<vmem>>, vector<8x128xf32>
    %48 = arith.addf %47, %39 : vector<8x128xf32>
    %c0_21 = arith.constant 0 : index
    %c0_22 = arith.constant 0 : index
    %49 = vector.load %arg7[%c0_21, %c0_22] : memref<8x128xf32, #tpu.memory_space<vmem>>, vector<8x128xf32>
    tpu.vector_store %arg7[%c0_21, %c0_22], %48 {strides = array<i32>} : memref<8x128xf32, #tpu.memory_space<vmem>>, vector<8x128xf32>,
    %c0_23 = arith.constant 0 : index
    %c0_24 = arith.constant 0 : index
    %50 = vector.load %arg8[%c0_23, %c0_24] : memref<8x128xf32, #tpu.memory_space<vmem>>, vector<8x128xf32>
    %51 = arith.addf %50, %43 : vector<8x128xf32>
    %c0_25 = arith.constant 0 : index
    %c0_26 = arith.constant 0 : index
    %52 = vector.load %arg8[%c0_25, %c0_26] : memref<8x128xf32, #tpu.memory_space<vmem>>, vector<8x128xf32>
    tpu.vector_store %arg8[%c0_25, %c0_26], %51 {strides = array<i32>} : memref<8x128xf32, #tpu.memory_space<vmem>>, vector<8x128xf32>,
    %c1_i32 = arith.constant 1 : i32
    %53 = arith.cmpi eq, %arg2, %c1_i32 : i32
    %54 = arith.extui %53 : i1 to i32
    %c0_i32_27 = arith.constant 0 : i32
    %55 = arith.cmpi ne, %54, %c0_i32_27 : i32
    scf.if %55 {
      %c0_28 = arith.constant 0 : index
      %c0_29 = arith.constant 0 : index
      %56 = vector.load %arg8[%c0_28, %c0_29] : memref<8x128xf32, #tpu.memory_space<vmem>>, vector<8x128xf32>
      %cst_30 = arith.constant dense<0.000000e+00> : vector<128xf32>
      %57 = vector.multi_reduction <add>, %56, %cst_30 [0] : vector<8x128xf32> to vector<128xf32>
      %58 = vector.shape_cast %57 : vector<128xf32> to vector<1x128xf32>
      %cst_31 = arith.constant 1.000000e-10 : f32
      %59 = vector.broadcast %cst_31 : f32 to vector<1x128xf32>
      %60 = arith.addf %58, %59 : vector<1x128xf32>
      %61 = tpu.reciprocal %60 : vector<1x128xf32> -> vector<1x128xf32>
      %cst_32 = arith.constant 1.600000e+01 : f32
      %62 = vector.broadcast %cst_32 : f32 to vector<1x128xf32>
      %63 = arith.subf %62, %58 : vector<1x128xf32>
      %cst_33 = arith.constant 1.000000e-10 : f32
      %64 = vector.broadcast %cst_33 : f32 to vector<1x128xf32>
      %65 = arith.addf %63, %64 : vector<1x128xf32>
      %66 = tpu.reciprocal %65 : vector<1x128xf32> -> vector<1x128xf32>
      %c0_34 = arith.constant 0 : index
      %c0_35 = arith.constant 0 : index
      %67 = vector.load %arg6[%c0_34, %c0_35] : memref<8x128xf32, #tpu.memory_space<vmem>>, vector<8x128xf32>
      %68 = vector.broadcast %61 : vector<1x128xf32> to vector<8x128xf32>
      %69 = arith.mulf %67, %68 : vector<8x128xf32>
      %c0_36 = arith.constant 0 : index
      %c0_37 = arith.constant 0 : index
      %70 = vector.load %arg7[%c0_36, %c0_37] : memref<8x128xf32, #tpu.memory_space<vmem>>, vector<8x128xf32>
      %71 = vector.broadcast %66 : vector<1x128xf32> to vector<8x128xf32>
      %72 = arith.mulf %70, %71 : vector<8x128xf32>
      %73 = arith.addf %69, %72 : vector<8x128xf32>
      %c0_38 = arith.constant 0 : index
      %c0_39 = arith.constant 0 : index
      %74 = vector.load %arg5[%c0_38, %c0_39] : memref<8x128xf32, #tpu.memory_space<vmem>>, vector<8x128xf32>
      %75 = arith.addf %74, %73 : vector<8x128xf32>
      %c0_40 = arith.constant 0 : index
      %c0_41 = arith.constant 0 : index
      %76 = vector.load %arg5[%c0_40, %c0_41] : memref<8x128xf32, #tpu.memory_space<vmem>>, vector<8x128xf32>
      tpu.vector_store %arg5[%c0_40, %c0_41], %75 {strides = array<i32>} : memref<8x128xf32, #tpu.memory_space<vmem>>, vector<8x128xf32>,
    } else {
    }
    return
  }
  func.func @transform_0(%arg0: i32, %arg1: i32, %arg2: i32) -> (i32, i32) {
    %c2_i32 = arith.constant 2 : i32
    %0 = arith.muli %arg0, %c2_i32 : i32
    %1 = arith.addi %0, %arg1 : i32
    %c0_i32 = arith.constant 0 : i32
    return %arg2, %1 : i32, i32
  }
  func.func @transform_1(%arg0: i32, %arg1: i32, %arg2: i32) -> (i32, i32) {
    %c2_i32 = arith.constant 2 : i32
    %0 = arith.muli %arg0, %c2_i32 : i32
    %1 = arith.addi %0, %arg1 : i32
    %c0_i32 = arith.constant 0 : i32
    return %arg2, %1 : i32, i32
  }
  func.func @transform_2(%arg0: i32, %arg1: i32, %arg2: i32) -> (i32, i32) {
    %c0_i32 = arith.constant 0 : i32
    %c0_i32_0 = arith.constant 0 : i32
    return %arg0, %c0_i32 : i32, i32
  }
}

</mosaic_0001>

<bundles_post_ra>
// kernel: tpu_custom_call.1
= control target key start
LH: loop header
LB: loop body
LE: loop exit
PB: predicated region body
PF: predicated region fallthrough
CT: control target
= control target key end

     0   :  { %s1095_s0 = inlined_call_operand.hbm [shape: f32[16,512], index: 0, kind: input, shape index: {}]   ;;  %s1096_s1 = inlined_call_operand.hbm [shape: f32[16,512], index: 1, kind: input, shape index: {}]   ;;  %s1097_s2 = inlined_call_operand.hbm [shape: f32[16,128], index: 2, kind: output, shape index: {}]  }
   0x1   :  { %1104 = sst [smem:[#allocation20_spill]] %s1095_s0 }
   0x2   :  { %7 = vsyncpa [#allocation6], 0 }
   0x3   :  { %9 = vsyncpa [#allocation6 + $0x1], 0 }
   0x4   :  { %10 = vsyncpa [#allocation9], 0 }
   0x5   :  { %12 = vsyncpa [#allocation9 + $0x1], 0 }
   0x6   :  { %13 = vsyncpa [#allocation7], 0 }
   0x7   :  { %15 = vsyncpa [#allocation7 + $0x1], 0  ;;  %s835_s9 = smov 0   ;;  %s837_s10 = smov 0  }
   0x8   :  { %s839_s11 = smov 0   ;;  %s841_s12 = smov 0  }
   0x9   :  { %s843_s13 = smov 0   ;;  %s845_s14 = smov 0  }
   0xa   :  { %s847_s15 = smov 0   ;;  %s849_s16 = smov 0  }
   0xb   :  { %s851_s17 = smov 0   ;;  %s853_s18 = smov 0  }
   0xc   :  { %s855_s19 = smov 0   ;;  %s857_s20 = smov 0  }
   0xd   :  { %s859_s21 = smov 0  }
   0xe LB: > { %1105 = sst [smem:[#allocation14_spill]] %s800_s18  ;;  %s453_s22 = sadd.s32 4294967295, %s812_s21   ;;  %s812_s21 = sphi %s859_s21, %s21_s21   ;;  %s808_s20 = sphi %s857_s20, %s1125_s20   ;;  %s804_s19 = sphi %s855_s19, %s1132_s19   ;;  %s800_s18 = sphi %s853_s18, %s1123_s18   ;;  %s796_s17 = sphi %s851_s17, %s1122_s17   ;;  %s792_s16 = sphi %s849_s16, %s1121_s16   ;;  %s788_s15 = sphi %s847_s15, %s1120_s15   ;;  %s784_s14 = sphi %s845_s14, %s1131_s14   ;;  %s780_s13 = sphi %s843_s13, %s1130_s13   ;;  %s776_s12 = sphi %s841_s12, %s1129_s12   ;;  %s772_s11 = sphi %s839_s11, %s1128_s11   ;;  %s768_s10 = sphi %s837_s10, %s1127_s10   ;;  %s764_s9 = sphi %s835_s9, %s1126_s9  }
   0xf   : > { %1106 = sst [smem:[#allocation15_spill]] %s804_s19  ;;  %s454_s23 = sadd.s32 4294967294, %s812_s21  }
  0x10   : > { %1107 = sst [smem:[#allocation16_spill]] %s808_s20  ;;  %s33_s24 = sadd.s32 1, %s800_s18 }
  0x11   : > { %s36_s25 = sadd.s32 1, %s804_s19  ;;  %p34_p0 = scmp.ge.s32.totalorder %s33_s24, 2 }
  0x12   : > { %s40_s26 = sadd.s32 1, %s808_s20  ;;  %s455_s27 = sshll.u32 %s808_s20, 1 }
  0x13   : > { %s1134_s24 = smov (%p34_p0, %s33_s24), 0  ;;  %s1136_s25 = smov (!%p34_p0, %s36_s25), %s804_s19 }
  0x14   : > { %1108 = sst [smem:[#allocation17_spill]] %s1134_s24  ;;  %s911_s29 = sadd.s32 %s804_s19, %s455_s27 }
  0x15   : > { %s48_s30 = ssub.s32 %s800_s18, %s1134_s24  ;;  %p38_p1 = scmp.ge.s32.totalorder %s1136_s25, 2 }
  0x16   : > { %p60_p2 = scmp.ne.s32.totalorder %s784_s14, %s780_s13  ;;  %p61_p3 = scmp.eq.s32.totalorder %s812_s21, 0 }
  0x17   : > { %p66_p4 = scmp.ne.s32.totalorder %s780_s13, %s776_s12  ;;  %s1138_s25 = smov (%p38_p1, %s1136_s25), 0 }
  0x18   : > { %1109 = sst [smem:[#allocation18_spill]] %s1138_s25  ;;  %s1140_s26 = smov (!%p38_p1, %s40_s26), %s808_s20 }
  0x19   : > { %p923_p5 = por %p61_p3, %p60_p2  ;;  %p67_p6 = scmp.eq.s32.totalorder %s453_s22, 0 }
  0x1a   : > { %p42_p7 = scmp.ge.s32.totalorder %s1140_s26, 2  ;;  %s111_s4 = sadd.s32 1, %s772_s11 }
  0x1b   : > { %p928_p8 = por %p67_p6, %p66_p4  ;;  %p121_p9 = scmp.ne.s32.totalorder %s772_s11, %s768_s10 }
  0x1c   : > { %s1142_s26 = smov (%p42_p7, %s1140_s26), 0  ;;  %p122_p10 = scmp.eq.s32.totalorder %s453_s22, 7 }
  0x1d   : > { %1112 = sst [smem:[#allocation19_spill]] %s1142_s26  ;;  %p127_p11 = scmp.ne.s32.totalorder %s768_s10, %s764_s9 }
  0x1e   : > { %s456_s6 = sshll.u32 %s1142_s26, 1  ;;  %s108_s7 = ssub.s32 %s808_s20, %s1142_s26 }
  0x1f   : > { %s47_s8 = sadd.s32 %s456_s6, %s1138_s25  ;;  %p109_p12 = scmp.eq.s32.totalorder %s108_s7, 0 }
  0x20   : > { %s49_s12 = ssub.s32 %s911_s29, %s47_s8  ;;  %p943_p13 = por %p122_p10, %p121_p9 }
  0x21   : > { %s50_s28 = sor.u32 %s49_s12, %s48_s30  ;;  %p128_p0 = scmp.eq.s32.totalorder %s454_s23, 7 }
  0x22   : > { %p51_p1 = scmp.eq.s32.totalorder %s50_s28, 0  ;;  %s1114_s24 = sadd.s32 1, %s784_s14 }
  0x23   : > { %s950_s22 = scalar_select %p109_p12, %s772_s11, %s111_s4  }
  0x24   : > { %s955_s19 = scalar_select %p51_p1, %s784_s14, %s1114_s24  }
  0x25   : > { %p957_p2 = por %p128_p0, %p127_p11  ;;  %p497_p3 = scmp.lt.s32.totalorder %s812_s21, 8 }
  0x26   : > { %s963_s7 = sand.u32 1, %s784_s14   ;;  %s463_s30 = sshll.u32 %s800_s18, 2 }
  0x27   : > { %s461_s8 = sshll.u32 %s963_s7, 3  ;;  %s159_s23 = sadd.s32 %s463_s30, %s911_s29 }
  0x28   : > { %s464_s12 = sshll.u32 %s159_s23, 7  ;;  %s152_s28 = scalar_lea.vmem [#allocation5], %s461_s8 }
  0x29   : > { %s163_s26 = sshll.u32 %s152_s28, 4  ;;  %s1116_s0 = sld [smem:[#allocation20_spill]]  ;;  %s164_s26 = int_to_ptr.vmem [resolvable:$true] %s163_s26 }
  0x2a   : > { %p973_p4 = pnand %p497_p3, %p923_p5  ;;  %p469_p6 = scmp.ge.s32.totalorder %s812_s21, 1 }
  0x2b   : > { %p190_p7 = scmp.lt.s32.totalorder %s812_s21, 9  ;;  %s149_s18 = scalar_lea.sflag [#allocation6], %s963_s7 }
  0x2c   : > { %p618_p9 = pneg %p973_p4  ;;  %s629_s29 = scalar_lea.vmem %s164_s26, 128 }
  0x2d   : > { %p630_p10 = scmp.ne.s32.totalorder %s164_s26, %s629_s29  ;;  %s814_s25 = smov [#allocation5]  }
  0x2e   : > { %s634_s30 = sshll.u32 %s814_s25, 4  ;;  %s635_s30 = int_to_ptr.vmem [resolvable:$false] %s634_s30 }
  0x2f   : > { %s161_s24 = scalar_lea.hbm %s1116_s0, %s464_s12  ;;  %p632_p11 = pnand %p630_p10, %p618_p9 }
  0x30   : > { %s636_s3 = scalar_lea.vmem %s635_s30, 256  ;;  %p637_p5 = scmp.lt.s32.totalorder %s164_s26, %s635_s30 }
  0x31   : > { %p633_p12 = pneg %p632_p11  ;;  %p638_p0 = scmp.lt.s32.totalorder %s636_s3, %s629_s29 }
  0x33   : > { %p639_p1 = por %p638_p0, %p637_p5 }
  0x35   : > { %p640_p3 = pnand %p639_p1, %p633_p12 }
  0x37   : > { %643 = shalt.err (!%p640_p3)
}
  0x38   : > { %489 = dma.hbm_to_vmem [thread:$0]  (!%p973_p4), %s161_s24, 128, %s164_s26, %s149_s18  }
  0x39   : > { %p991_p10 = pnand %p469_p6, %p190_p7  ;;  %s183_s29 = scalar_lea.hbm %s1096_s1, %s464_s12 }
  0x3a   : > { %s174_s25 = scalar_lea.vmem [#allocation8], %s461_s8  ;;  %s171_s3 = scalar_lea.sflag [#allocation9], %s963_s7 }
  0x3b   : > { %s185_s30 = sshll.u32 %s174_s25, 4  ;;  %s815_s18 = smov [#allocation8]   ;;  %s186_s30 = int_to_ptr.vmem [resolvable:$true] %s185_s30 }
  0x3c   : > { %s657_s0 = scalar_lea.vmem %s186_s30, 128  ;;  %s662_s26 = sshll.u32 %s815_s18, 4  ;;  %s663_s26 = int_to_ptr.vmem [resolvable:$false] %s662_s26 }
  0x3d   : > { %p658_p11 = scmp.ne.s32.totalorder %s186_s30, %s657_s0  ;;  %s664_s24 = scalar_lea.vmem %s663_s26, 256 }
  0x3e   : > { %p665_p6 = scmp.lt.s32.totalorder %s186_s30, %s663_s26  ;;  %p666_p7 = scmp.lt.s32.totalorder %s664_s24, %s657_s0 }
  0x3f   : > { %p660_p12 = pnand %p658_p11, %p618_p9 }
  0x40   : > { %p667_p0 = por %p666_p7, %p665_p6 }
  0x41   : > { %p661_p5 = pneg %p660_p12 }
  0x43   : > { %p668_p1 = pnand %p667_p0, %p661_p5 }
  0x45   : > { %671 = shalt.err (!%p668_p1)
}
  0x46   : > { %492 = dma.hbm_to_vmem [thread:$0]  (!%p973_p4), %s183_s29, 128, %s186_s30, %s171_s3  }
  0x47   : > { %194 = sbr.rel (%p991_p10) target bundleno = 214 (0xd6), region = 28  ;;  %s196_s7 = sand.u32 (!%p991_p10), 1, %s780_s13  }
  0x48   : > { %s470_s8 = sshll.u32 (!%p991_p10), %s196_s7, 3  ;;  %s197_s12 = scalar_lea.sflag (!%p991_p10), [#allocation6], %s196_s7 }
  0x49   : > { %s200_s28 = scalar_lea.vmem (!%p991_p10), [#allocation5], %s470_s8 }
  0x4c   : > { %751 = dma.done.wait (%p928_p8), %s197_s12, 128  }
  0x4d   : > { %753 = vsyncadd (%p928_p8), %s197_s12, 4294967168  ;;  %s206_s0 = scalar_lea.sflag [#allocation9], %s196_s7  ;;  %s209_s4 = scalar_lea.vmem [#allocation8], %s470_s8 }
  0x4e   : > { %755 = dma.done.wait (%p928_p8), %s206_s0, 128  }
  0x4f   : > { %757 = vsyncadd (%p928_p8), %s206_s0, 4294967168  ;;  %s232_s20 = sand.u32 1, %s768_s10   ;;  %p239_p4 = scmp.eq.s32.totalorder %s792_s16, 0 }
  0x50   : > { %s472_s23 = sshll.u32 %s232_s20, 3  ;;  %p240_p9 = scmp.eq.s32.totalorder %s788_s15, 0 }
  0x51   : > { %s1020_s29 = scalar_lea.vmem [#allocation10], %s472_s23 }
  0x52   : > { %p241_p3 = pnand %p240_p9, %p239_p4 }
  0x54   : > { %244 = sbr.rel (%p241_p3) target bundleno = 91 (0x5b), region = 40 }
  0x59   : > { %v816_v0 = vmov 0.0  }
  0x5a   : > { %245 = vst [vmem:[%s1020_s29] sm:$0xff] %v816_v0 }
  0x5b PF: > { %p473_p10 = scmp.ne.s32.totalorder %s788_s15, 0 }
  0x5d   : > { %248 = sbr.rel (%p473_p10) target bundleno = 101 (0x65), region = 44 }
  0x62   : > { %v817_v1 = vmov 0.0  }
  0x63   : > { %249 = vst [vmem:[#allocation2] sm:$0xff] %v817_v1  ;;  %250 = vst [vmem:[#allocation3] sm:$0xff] %v817_v1 }
  0x64   : > { %251 = vst [vmem:[#allocation4] sm:$0xff] %v817_v1 }
  0x65 PF: > { %v252_v2 = vld [vmem:[%s200_s28] sm:$0xff]  ;;  %v253_v3 = vld [vmem:[%s209_s4] sm:$0xff]  ;;  %v818_v7 = vmov 0.0   ;;  %p475_p8 = scmp.ne.s32.totalorder %s788_s15, 1 }
  0x66   : > { %v254_v4 = vand.u32 2147483647, %v252_v2  ;;  %vm285_vm0 = vcmp.ne.f32.partialorder %v253_v3, 0.0  ;;  %v269_v17 = vsub.f32 0.0, %v252_v2  ;;  %vm274_vm2 = vcmp.ge.f32.partialorder %v252_v2, 0.0 }
  0x67   : > { %v474_v8 = vsel %vm285_vm0, 1.0, %v818_v7  ;;  %v267_v21 = vmax.f32 %v252_v2, 0.0  ;;  %v282_v25 = vsub.f32 1.0, %v253_v3 }
  0x68   : > { %v255_v6 = vsub.f32 0.0, %v254_v4  ;;  %v270_v24 = vmax.f32 %v269_v17, 0.0 }
  0x6a   : > { %v256_v10 = vmul.f32 1.442695, %v255_v6  ;;  %v291_v33 = vld [vmem:[#allocation3] sm:$0xff]  ;;  %v288_v36 = vld [vmem:[#allocation2] sm:$0xff] }
  0x6b   : > { %v294_v5 = vld [vmem:[#allocation4] sm:$0xff] }
  0x6c   : > { %v295_v9 = vadd.f32 %v474_v8, %v294_v5  ;;  %606 = vpow2.f32 %v256_v10 }
  0x6e   : > { %296 = vst [vmem:[#allocation4] sm:$0xff] %v295_v9 }
  0x79   : > { %v607_v11 = vpop.eup %606 }
  0x7a   : > { %v258_v12 = vadd.f32 1.0, %v607_v11  ;;  %v261_v13 = vmul.f32 -0.5, %v607_v11  ;;  %v264_v15 = vand.u32 2147483647, %v607_v11 }
  0x7c   : > { %608 = vlog2.f32 %v258_v12  ;;  %v262_v14 = vadd.f32 1.0, %v261_v13  ;;  %vm265_vm1 = vcmp.lt.f32.partialorder %v264_v15, 0.0004427343 }
  0x7d   : > { %610 = vrcp.f32 %v258_v12 }
  0x7e   : > { %v263_v16 = vmul.f32 %v607_v11, %v262_v14 }
  0x89   : > { %v609_v18 = vpop.eup %608 }
  0x8a   : > { %v611_v19 = vpop.eup %610  ;;  %v260_v20 = vmul.f32 0.6931472, %v609_v18 }
  0x8b   : > { %v275_v22 = vmul.f32 %v611_v19, %v607_v11 }
  0x8c   : > { %v266_v23 = vsel %vm265_vm1, %v263_v16, %v260_v20 }
  0x8d   : > { %v276_v26 = vsel %vm274_vm2, %v611_v19, %v275_v22  ;;  %v268_v28 = vadd.f32 %v267_v21, %v266_v23  ;;  %v271_v30 = vadd.f32 %v270_v24, %v266_v23 }
  0x8e   : > { %v277_v27 = vsub.f32 1.0, %v276_v26  ;;  %v279_v29 = vmul.f32 %v276_v26, %v276_v26 }
  0x90   : > { %v278_v31 = vmul.f32 %v277_v27, %v277_v27  ;;  %v283_v32 = vmul.f32 %v282_v25, %v279_v29 }
  0x92   : > { %v280_v34 = vmul.f32 %v278_v31, %v253_v3  ;;  %v284_v35 = vmul.f32 %v283_v32, %v268_v28 }
  0x94   : > { %v281_v37 = vmul.f32 %v280_v34, %v271_v30  ;;  %v292_v38 = vadd.f32 %v291_v33, %v284_v35  ;;  %300 = sbr.rel (%p475_p8) target bundleno = 191 (0xbf), region = 48 }
  0x96   : > { %v289_v39 = vadd.f32 %v288_v36, %v281_v37  ;;  %293 = vst [vmem:[#allocation3] sm:$0xff] %v292_v38 }
  0x98   : > { %290 = vst [vmem:[#allocation2] sm:$0xff] %v289_v39 }
  0x99   : > { %v301_v40 = vld [vmem:[#allocation4] sm:$0xff]  ;;  %v318_v56 = vld [vmem:[%s1020_s29] sm:$0xff] }
  0x9a   : > { %v302_v41 = vrot.slane %v301_v40, 4 }
  0x9c   : > { %v303_v42 = vadd.f32 %v302_v41, %v301_v40 }
  0x9d   : > { %v315_v52 = vld [vmem:[#allocation3] sm:$0xff] }
  0x9e   : > { %v304_v43 = vrot.slane %v303_v42, 2 }
  0x9f   : > { %v313_v50 = vld [vmem:[#allocation2] sm:$0xff] }
  0xa0   : > { %v305_v44 = vadd.f32 %v304_v43, %v303_v42 }
  0xa2   : > { %v306_v45 = vrot.slane %v305_v44, 1 }
  0xa4   : > { %v307_v46 = vadd.f32 %v306_v45, %v305_v44 }
  0xa6   : > { %v308_v47 = vadd.f32 1e-10, %v307_v46  ;;  %v310_v48 = vsub.f32 16.0, %v307_v46 }
  0xa8   : > { %612 = vrcp.f32 %v308_v47  ;;  %v311_v49 = vadd.f32 1e-10, %v310_v48 }
  0xaa   : > { %614 = vrcp.f32 %v311_v49 }
  0xb5   : > { %v613_v51 = vpop.eup %612 }
  0xb6   : > { %v314_v53 = vmul.f32 %v613_v51, %v313_v50 }
  0xb7   : > { %v615_v54 = vpop.eup %614 }
  0xb8   : > { %v316_v55 = vmul.f32 %v615_v54, %v315_v52 }
  0xba   : > { %v317_v57 = vadd.f32 %v316_v55, %v314_v53 }
  0xbc   : > { %v319_v58 = vadd.f32 %v318_v56, %v317_v57 }
  0xbe   : > { %320 = vst [vmem:[%s1020_s29] sm:$0xff] %v319_v58 }
  0xbf PF: > { %s477_s15 = sshll.u32 %s796_s17, 7  ;;  %s335_s30 = sshll.u32 %s1020_s29, 4  ;;  %s336_s30 = int_to_ptr.vmem [resolvable:$true] %s335_s30 }
  0xc0   : > { %s333_s25 = scalar_lea.hbm %s1097_s2, %s477_s15  ;;  %s322_s3 = scalar_lea.sflag [#allocation7], %s232_s20 }
  0xc1   : > { %s672_s18 = scalar_lea.vmem %s336_s30, 128  ;;  %s819_s26 = smov [#allocation10]  }
  0xc2   : > { %p673_p11 = scmp.ne.s32.totalorder %s336_s30, %s672_s18  ;;  %s676_s24 = sshll.u32 %s819_s26, 4  ;;  %s677_s24 = int_to_ptr.vmem [resolvable:$false] %s676_s24 }
  0xc3   : > { %s678_s7 = scalar_lea.vmem %s677_s24, 256  ;;  %p679_p6 = scmp.lt.s32.totalorder %s336_s30, %s677_s24 }
  0xc4   : > { %p674_p12 = pnand %p673_p11, %p943_p13  ;;  %p680_p7 = scmp.lt.s32.totalorder %s678_s7, %s672_s18 }
  0xc6   : > { %p675_p5 = pneg %p674_p12  ;;  %p681_p0 = por %p680_p7, %p679_p6 }
  0xc8   : > { %p682_p1 = pnand %p681_p0, %p675_p5 }
  0xca   : > { %685 = shalt.err (!%p682_p1)
}
  0xcb   : > { %s686_s17 = scalar_lea.hbm %s333_s25, 128  ;;  %s690_s28 = scalar_lea.hbm %s1097_s2, 256 }
  0xcc   : > { %p687_p4 = scmp.ne.s32.totalorder %s333_s25, %s686_s17  ;;  %p691_p10 = scmp.lt.s32.totalorder %s333_s25, %s1097_s2 }
  0xcd   : > { %p692_p8 = scmp.lt.s32.totalorder %s690_s28, %s686_s17 }
  0xce   : > { %p688_p9 = pnand %p687_p4, %p943_p13 }
  0xcf   : > { %p693_p11 = por %p692_p8, %p691_p10 }
  0xd0   : > { %p689_p3 = pneg %p688_p9 }
  0xd2   : > { %p694_p12 = pnand %p693_p11, %p689_p3 }
  0xd4   : > { %697 = shalt.err (!%p694_p12)
}
  0xd5   : > { %484 = dma.vmem_to_hbm [thread:$0]  (%p943_p13), %s336_s30, 128, %s333_s25, %s322_s3  }
  0xd6 PF: > { %p498_p5 = scmp.ge.s32.totalorder %s812_s21, 2  ;;  %s347_s20 = sand.u32 1, %s764_s9  }
  0xd7   : > { %s348_s23 = scalar_lea.sflag [#allocation7], %s347_s20 }
  0xd8   : > { %p494_p6 = pnand %p498_p5, %p957_p2 }
  0xda   : > { %p495_p7 = pneg %p494_p6 }
  0xdc   : > { %759 = dma.done.wait (%p495_p7), %s348_s23, 128  }
  0xdd   : > { %761 = vsyncadd (%p495_p7), %s348_s23, 4294967168  ;;  %s21_s21 = sadd.s32 1, %s812_s21   ;;  %s1120_s15 = sld [smem:[#allocation14_spill]] }
  0xde   : > { %p1051_p0 = scmp.ge.s32.totalorder %s21_s21, 10   ;;  %s1121_s16 = sld [smem:[#allocation15_spill]] }
  0xdf   : > { %s1122_s17 = sld [smem:[#allocation16_spill]]  ;;  %s1126_s9 = smov %s768_s10 }
  0xe0   : > { %s1123_s18 = sld [smem:[#allocation17_spill]]  ;;  %s1127_s10 = smov %s772_s11 }
  0xe1   : > { %s1124_s27 = sld [smem:[#allocation18_spill]]  ;;  %s1128_s11 = smov %s950_s22 }
  0xe2   : > { %s1125_s20 = sld [smem:[#allocation19_spill]]  ;;  %s1129_s12 = smov %s780_s13 }
  0xe3   : > { %s1130_s13 = smov %s784_s14  ;;  %s1131_s14 = smov %s955_s19 }
  0xe4   :  { %20 = sbr.rel (!%p1051_p0) target bundleno = 14 (0xe), region = 98 }
  0xe7   : > { %s1132_s19 = smov %s1124_s27 }
  0xe9   :  { %353 = vsyncpa [#allocation6], 1 }
  0xea   :  { %355 = vsyncpa [#allocation6 + $0x1], 1 }
  0xeb   :  { %356 = vsyncpa [#allocation9], 1 }
  0xec   :  { %358 = vsyncpa [#allocation9 + $0x1], 1 }
  0xed   :  { %359 = vsyncpa [#allocation7], 1 }
  0xee   :  { %361 = vsyncpa [#allocation7 + $0x1], 1 }

</bundles_post_ra>
